<compile_context>
chip_gen: v6e
topology: v6e:2x2x1
jax: 0.10.0
libtpu: 0.0.40
codegen_flags: <defaults>
</compile_context>

<pallas_src>
import functools

import jax
import jax.numpy as jnp
from jax.experimental import pallas as pl
from jax.experimental.pallas import tpu as pltpu


# ----------------------------------------------------------------------------
# Fused kernel: pos_embed MLP + image GNN path + EGNN gate + scene-graph path
# (one grid step == one graph; the batch dim is squeezed by the BlockSpecs)
# ----------------------------------------------------------------------------
def _fused_graph_energy_kernel(
        # per-graph data
        bbox_ref, imx_ref, ima_ref, sgx_ref, sget_ref, src_ref, dst_ref, sga_ref,
        # pos_embed: Linear(9,32) -> BN(32) -> Linear(32,128) -> ReLU
        w1_ref, b1_ref, gamma_ref, beta_ref, w2_ref, b2_ref,
        # image path: obj_embedding + GNN layer (packed [w_self; w_nb])
        wobj_ref, bobj_ref, wim_ref, bgnn_ref,
        # EGNN gate: (w_rel @ w_gate) column + (c_rel, b_gate) SMEM scalars
        wg_ref, gconst_ref,
        # scene-graph path: obj_label_embedding (split) + packed [w_msg | w_self]
        wlo_ref, wlp_ref, blbl_ref, wsg_ref, bnode_ref,
        # packed output (N, 2*D): [:, :D] = image nodes, [:, D:] = scene nodes
        o_ref):
    f32, bf16 = jnp.float32, jnp.bfloat16
    d = wsg_ref.shape[0]

    # ---- pos_embed(bbox): Linear -> BatchNorm1d -> Linear -> ReLU ----------
    # TODO(synk): training-mode batch statistics, computed per graph (eval mode
    #             would use running_mean/running_var, not part of forward()).
    h1 = jnp.dot(bbox_ref[...], w1_ref[...], preferred_element_type=f32) + b1_ref[...]
    mean = jnp.mean(h1, axis=0, keepdims=True)
    var = jnp.mean(jnp.square(h1 - mean), axis=0, keepdims=True)   # two-pass var
    hn = (h1 - mean) * jax.lax.rsqrt(var + 1e-5) * gamma_ref[...] + beta_ref[...]
    pe = jnp.maximum(
        jnp.dot(hn.astype(bf16), w2_ref[...], preferred_element_type=f32)
        + b2_ref[...], 0.0)

    # ---- image graph: obj_embedding -> GNN layer ---------------------------
    # TODO(synk): GNNLayer internals are not in the reference source; canonical
    #             adjacency message passing h' = ReLU(hWs + (Ah)Wn + b) assumed.
    h_im = (jnp.dot(imx_ref[...], wobj_ref[...], preferred_element_type=f32)
            + bobj_ref[...])
    nbr = jnp.dot(ima_ref[...], h_im.astype(bf16), preferred_element_type=f32)
    cat_im = jnp.concatenate([h_im, nbr], axis=-1).astype(bf16)        # (N, 2D)
    im_out = jnp.maximum(
        jnp.dot(cat_im, wim_ref[...], preferred_element_type=f32) + bgnn_ref[...],
        0.0)

    # ---- EGNN edge gate built on the (src, dst) edge list -------------------
    # Per-edge logit row (1,E) scattered to (N,N) with one-hot MXU matmuls;
    # equals <to_dense(scatter-add of rel embeddings), w_gate> exactly
    # (duplicate edges sum, as in torch.sparse to_dense()).
    # TODO(synk): EGNNLayer internals are not in the reference source; canonical
    #             edge-gated message passing assumed.  The updated edge states
    #             of sg_layer are dead in the reference forward() and omitted.
    n = sga_ref.shape[0]
    e = sget_ref.shape[1]
    c_rel = gconst_ref[0, 0]          # (b_rel @ w_gate): per-edge constant
    b_gate = gconst_ref[0, 1]         # global gate bias
    logit_row = jnp.sum(wg_ref[...] * sget_ref[...].astype(f32),
                        axis=0, keepdims=True) + c_rel                  # (1, E)
    src_oh = (jax.lax.broadcasted_iota(jnp.int32, (n, e), 0)
              == src_ref[...]).astype(f32)                              # (N, E)
    dst_oh = (jax.lax.broadcasted_iota(jnp.int32, (e, n), 1)
              == dst_ref[...]).astype(bf16)                             # (E, N)
    logit_mat = jnp.dot((src_oh * logit_row).astype(bf16), dst_oh,
                        preferred_element_type=f32)                     # (N, N)
    gate = jax.nn.sigmoid(logit_mat + b_gate)

    # ---- scene graph: obj_label_embedding (split concat) + EGNN node update
    # obj_label_embedding(cat(labels, pos_embed)) == x@W[:C] + pe@W[C:] + b
    h_sg = (jnp.dot(sgx_ref[...], wlo_ref[...], preferred_element_type=f32)
            + jnp.dot(pe.astype(bf16), wlp_ref[...], preferred_element_type=f32)
            + blbl_ref[...])
    hm_self = jnp.dot(h_sg.astype(bf16), wsg_ref[...],
                      preferred_element_type=f32)                       # (N, 2D)
    hm = hm_self[:, :d]              # message projection  (h_sg @ w_msg)
    self_t = hm_self[:, d:]          # self projection     (h_sg @ w_self)
    msg = jnp.dot((sga_ref[...] * gate).astype(bf16), hm.astype(bf16),
                  preferred_element_type=f32)
    sg_out = jnp.maximum(self_t + msg + bnode_ref[...], 0.0)

    # ---- lane-dense packed store (one 128-lane-wide slab) -------------------
    o_ref[...] = jnp.concatenate([im_out, sg_out], axis=-1)


# ----------------------------------------------------------------------------
# Wrapper: one pallas_call, grid over the batch of graphs
# ----------------------------------------------------------------------------
def graph_energy_model_forward(params,
                               im_node_states, im_adj_matrix,
                               sg_node_states, sg_edge_states,
                               sg_adj_list, sg_adj_matrix, bbox):
    f32, bf16 = jnp.float32, jnp.bfloat16
    bsz, n, cin = im_node_states.shape
    num_obj = sg_node_states.shape[-1]
    e = sg_edge_states.shape[1]
    num_rel = sg_edge_states.shape[-1]

    w1, b1, gamma, beta, w2, b2 = params["pos_mlp"]
    w_obj, b_obj, w_self_im, w_nb_im, b_gnn_im = params["im"]
    w_rel, b_rel = params["rel_lbl"]
    w_lbl, b_lbl, w_gate, b_gate, w_msg, w_self_sg, b_node_sg = params["sg"]
    d = w_obj.shape[1]

    # ---- wrapper-side (exact, f32) parameter folding -------------------------
    wg_fold = w_rel @ w_gate                                      # (num_rel, 1)
    gate_consts = jnp.concatenate([b_rel @ w_gate, b_gate], axis=1)  # (1, 2)
    w_im_pack = jnp.concatenate([w_self_im, w_nb_im], axis=0)    # (2D, D) K-cat
    w_sg_pack = jnp.concatenate([w_msg, w_self_sg], axis=1)      # (D, 2D) N-cat
    w_lbl_obj, w_lbl_pos = w_lbl[:num_obj], w_lbl[num_obj:]

    # edge endpoints shaped for in-kernel one-hot construction; edge labels
    # pre-transposed so the gate logit stays lane-major.
    src_ids = sg_adj_list[..., 0].astype(jnp.int32).reshape(bsz, 1, e)
    dst_ids = sg_adj_list[..., 1].astype(jnp.int32).reshape(bsz, e, 1)
    sge_t = jnp.swapaxes(sg_edge_states, 1, 2).astype(bf16)      # (B, num_rel, E)

    # pure-MXU operands in bf16 (single-pass matmuls); biases / BN params /
    # scalar constants stay f32.
    args = (
        bbox.astype(bf16), im_node_states.astype(bf16), im_adj_matrix.astype(bf16),
        sg_node_states.astype(bf16), sge_t, src_ids, dst_ids,
        sg_adj_matrix.astype(bf16),
        w1.astype(bf16), b1, gamma, beta, w2.astype(bf16), b2,
        w_obj.astype(bf16), b_obj, w_im_pack.astype(bf16), b_gnn_im,
        wg_fold, gate_consts,
        w_lbl_obj.astype(bf16), w_lbl_pos.astype(bf16), b_lbl,
        w_sg_pack.astype(bf16), b_node_sg,
    )

    def graph_spec(rows, cols):
        # one graph per grid step; batch dim squeezed out of the kernel ref
        return pl.BlockSpec((None, rows, cols), lambda b: (b, 0, 0))

    def param_spec(x):
        # whole-array block, constant index map -> stays resident across steps
        return pl.BlockSpec(x.shape, lambda b: (0, 0))

    smem_spec = pl.BlockSpec(memory_space=pltpu.MemorySpace.SMEM)

    in_specs = (
        [graph_spec(n, 9), graph_spec(n, cin), graph_spec(n, n),
         graph_spec(n, num_obj), graph_spec(num_rel, e),
         graph_spec(1, e), graph_spec(e, 1), graph_spec(n, n)]
        + [param_spec(x) for x in (w1, b1, gamma, beta, w2, b2,
                                   w_obj, b_obj, w_im_pack, b_gnn_im, wg_fold)]
        + [smem_spec]                                            # gate_consts
        + [param_spec(x) for x in (w_lbl_obj, w_lbl_pos, b_lbl,
                                   w_sg_pack, b_node_sg)]
    )

    packed = pl.pallas_call(
        _fused_graph_energy_kernel,
        out_shape=jax.ShapeDtypeStruct((bsz, n, 2 * d), f32),
        grid=(bsz,),
        in_specs=in_specs,
        out_specs=pl.BlockSpec((None, n, 2 * d), lambda b: (b, 0, 0)),
        compiler_params=pltpu.CompilerParams(
            dimension_semantics=("parallel",)),   # use both TCs on v7x
    )(*args)

    return packed[..., :d], packed[..., d:]


# ----------------------------------------------------------------------------
# Pure-JAX reference (original dense-edge-tensor formulation), single graph
# ----------------------------------------------------------------------------
def _reference_forward_single(params, im_x, im_a, sg_x, sg_e, adj_list, sg_a, bbox):
    w1, b1, gamma, beta, w2, b2 = params["pos_mlp"]
    h1 = bbox @ w1 + b1
    mean = jnp.mean(h1, axis=0, keepdims=True)
    var = jnp.mean((h1 - mean) ** 2, axis=0, keepdims=True)
    pe = jnp.maximum(
        ((h1 - mean) * jax.lax.rsqrt(var + 1e-5) * gamma + beta) @ w2 + b2, 0.0)

    w_obj, b_obj, w_self_im, w_nb_im, b_gnn_im = params["im"]
    h_im = im_x @ w_obj + b_obj
    im_out = jnp.maximum(h_im @ w_self_im + (im_a @ h_im) @ w_nb_im + b_gnn_im, 0.0)

    w_rel, b_rel = params["rel_lbl"]
    edge_emb = sg_e @ w_rel + b_rel
    n = sg_x.shape[0]
    e_dense = jnp.zeros((n, n, edge_emb.shape[-1]), jnp.float32)
    e_dense = e_dense.at[adj_list[:, 0], adj_list[:, 1]].add(edge_emb)

    w_lbl, b_lbl, w_gate, b_gate, w_msg, w_self_sg, b_node = params["sg"]
    h_sg = jnp.concatenate([sg_x, pe], axis=-1) @ w_lbl + b_lbl
    gate = jax.nn.sigmoid(jnp.einsum("ijd,dk->ij", e_dense, w_gate) + b_gate[0, 0])
    msg = (sg_a * gate) @ (h_sg @ w_msg)
    sg_out = jnp.maximum(h_sg @ w_self_sg + msg + b_node, 0.0)
    return im_out, sg_out


# ----------------------------------------------------------------------------
# Deterministic parameter / input construction + run
# ----------------------------------------------------------------------------
def _init_linear(key, fan_in, fan_out):
    k1, k2 = jax.random.split(key)
    bound = 1.0 / (fan_in ** 0.5)
    w = jax.random.uniform(k1, (fan_in, fan_out), jnp.float32, -bound, bound)
    b = jax.random.uniform(k2, (1, fan_out), jnp.float32, -bound, bound)
    return w, b


if __name__ == "__main__":
    B = 8                     # graphs per pallas_call (grid axis)
    IN_CHANNELS = 64
    OBJ_EMBED_DIM = 64
    REL_EMBED_DIM = 64
    NUM_OBJ_CLASSES = 32
    NUM_REL_CLASSES = 16
    N_NODE, N_EDGE = 16, 24

    root = jax.random.PRNGKey(0)
    keys = jax.random.split(root, 24)

    # --- parameters -------------------------------------------------------
    w1, b1 = _init_linear(keys[0], 9, 32)
    gamma = jnp.ones((1, 32), jnp.float32)
    beta = jnp.zeros((1, 32), jnp.float32)
    w2, b2 = _init_linear(keys[1], 32, 128)

    w_obj, b_obj = _init_linear(keys[2], IN_CHANNELS, OBJ_EMBED_DIM)
    w_self_im, _ = _init_linear(keys[3], OBJ_EMBED_DIM, OBJ_EMBED_DIM)
    w_nb_im, b_gnn_im = _init_linear(keys[4], OBJ_EMBED_DIM, OBJ_EMBED_DIM)

    w_rel, b_rel = _init_linear(keys[5], NUM_REL_CLASSES, REL_EMBED_DIM)

    w_lbl, b_lbl = _init_linear(keys[6], NUM_OBJ_CLASSES + 128, OBJ_EMBED_DIM)
    w_gate = jax.random.uniform(keys[7], (REL_EMBED_DIM, 1), jnp.float32,
                                -1.0 / (REL_EMBED_DIM ** 0.5),
                                1.0 / (REL_EMBED_DIM ** 0.5))
    b_gate = jnp.zeros((1, 1), jnp.float32)
    w_msg, _ = _init_linear(keys[8], OBJ_EMBED_DIM, OBJ_EMBED_DIM)
    w_self_sg, b_node_sg = _init_linear(keys[9], OBJ_EMBED_DIM, OBJ_EMBED_DIM)

    params = {
        "pos_mlp": (w1, b1, gamma, beta, w2, b2),
        "im": (w_obj, b_obj, w_self_im, w_nb_im, b_gnn_im),
        "rel_lbl": (w_rel, b_rel),
        "sg": (w_lbl, b_lbl, w_gate, b_gate, w_msg, w_self_sg, b_node_sg),
    }

    # --- batched inputs (B independent graphs) -----------------------------
    im_node_states = jax.random.normal(keys[10], (B, N_NODE, IN_CHANNELS),
                                       jnp.float32)
    im_adj_matrix = (jax.random.uniform(keys[11], (B, N_NODE, N_NODE)) > 0.5
                     ).astype(jnp.float32)
    sg_node_states = jax.random.normal(keys[12], (B, N_NODE, NUM_OBJ_CLASSES),
                                       jnp.float32)
    sg_edge_states = jax.random.normal(keys[13], (B, N_EDGE, NUM_REL_CLASSES),
                                       jnp.float32)
    bbox = jax.random.uniform(keys[14], (B, N_NODE, 9), jnp.float32)

    src = jax.random.randint(keys[15], (B, N_EDGE), 0, N_NODE)
    dst = (src + 1 + jax.random.randint(keys[16], (B, N_EDGE), 0, N_NODE - 1)
           ) % N_NODE
    sg_adj_list = jnp.stack([src, dst], axis=-1).astype(jnp.int32)   # (B, E, 2)
    bidx = jnp.broadcast_to(jnp.arange(B)[:, None], (B, N_EDGE))
    # duplicate edges sum their rel embeddings (torch to_dense semantics); the
    # adjacency itself stays binary (pair2matrix).
    sg_adj_matrix = jnp.zeros((B, N_NODE, N_NODE), jnp.float32
                              ).at[bidx, src, dst].set(1.0)

    # --- run ----------------------------------------------------------------
    fwd = jax.jit(graph_energy_model_forward)
    im_out, sg_out = fwd(params, im_node_states, im_adj_matrix,
                         sg_node_states, sg_edge_states,
                         sg_adj_list, sg_adj_matrix, bbox)
    jax.block_until_ready((im_out, sg_out))

    with jax.default_matmul_precision("highest"):
        ref_im, ref_sg = jax.vmap(
            functools.partial(_reference_forward_single, params))(
                im_node_states, im_adj_matrix, sg_node_states, sg_edge_states,
                sg_adj_list, sg_adj_matrix, bbox)

    assert im_out.shape == (B, N_NODE, OBJ_EMBED_DIM)
    assert sg_out.shape == (B, N_NODE, OBJ_EMBED_DIM)
    assert jnp.all(jnp.isfinite(im_out)) and jnp.all(jnp.isfinite(sg_out))
    # Kernel uses single-pass bf16 MXU matmuls (f32 accumulation) per the perf
    # review; the reference is full-f32 "highest" precision, hence the relaxed
    # tolerance. All algebraic rewrites (split/packed matmuls, folded gate,
    # one-hot scatter) are exact.
    assert jnp.allclose(im_out, ref_im, rtol=5e-2, atol=5e-2)
    assert jnp.allclose(sg_out, ref_sg, rtol=5e-2, atol=5e-2)
    print("KERNEL_OK")
</pallas_src>

<mosaic_0001>
module attributes {stable_mosaic.version = 11 : i64} {
  func.func @_fused_graph_energy_kernel(%arg0: i32, %arg1: memref<1x16x9xbf16, #tpu.memory_space<vmem>>, %arg2: memref<1x16x64xbf16, #tpu.memory_space<vmem>>, %arg3: memref<1x16x16xbf16, #tpu.memory_space<vmem>>, %arg4: memref<1x16x32xbf16, #tpu.memory_space<vmem>>, %arg5: memref<1x16x24xbf16, #tpu.memory_space<vmem>>, %arg6: memref<1x1x24xi32, #tpu.memory_space<vmem>>, %arg7: memref<1x24x1xi32, #tpu.memory_space<vmem>>, %arg8: memref<1x16x16xbf16, #tpu.memory_space<vmem>>, %arg9: memref<9x32xbf16, #tpu.memory_space<vmem>>, %arg10: memref<1x32xf32, #tpu.memory_space<vmem>>, %arg11: memref<1x32xf32, #tpu.memory_space<vmem>>, %arg12: memref<1x32xf32, #tpu.memory_space<vmem>>, %arg13: memref<32x128xbf16, #tpu.memory_space<vmem>>, %arg14: memref<1x128xf32, #tpu.memory_space<vmem>>, %arg15: memref<64x64xbf16, #tpu.memory_space<vmem>>, %arg16: memref<1x64xf32, #tpu.memory_space<vmem>>, %arg17: memref<128x64xbf16, #tpu.memory_space<vmem>>, %arg18: memref<1x64xf32, #tpu.memory_space<vmem>>, %arg19: memref<16x1xf32, #tpu.memory_space<vmem>>, %arg20: memref<1x2xf32, #tpu.memory_space<smem>>, %arg21: memref<32x64xbf16, #tpu.memory_space<vmem>>, %arg22: memref<128x64xbf16, #tpu.memory_space<vmem>>, %arg23: memref<1x64xf32, #tpu.memory_space<vmem>>, %arg24: memref<64x128xbf16, #tpu.memory_space<vmem>>, %arg25: memref<1x64xf32, #tpu.memory_space<vmem>>, %arg26: memref<1x16x128xf32, #tpu.memory_space<vmem>>) attributes {dimension_semantics = [#tpu.dimension_semantics<parallel>], iteration_bounds = array<i64: 8>, scalar_prefetch = 0 : i64, scratch_operands = 0 : i64, tpu.core_type = #tpu.core_type<tc>, window_params = [{transform_indices = @transform_0, window_bounds = array<i64: 1, 16, 9>}, {transform_indices = @transform_1, window_bounds = array<i64: 1, 16, 64>}, {transform_indices = @transform_2, window_bounds = array<i64: 1, 16, 16>}, {transform_indices = @transform_3, window_bounds = array<i64: 1, 16, 32>}, {transform_indices = @transform_4, window_bounds = array<i64: 1, 16, 24>}, {transform_indices = @transform_5, window_bounds = array<i64: 1, 1, 24>}, {transform_indices = @transform_6, window_bounds = array<i64: 1, 24, 1>}, {transform_indices = @transform_7, window_bounds = array<i64: 1, 16, 16>}, {pipeline_mode = #tpu.pipeline_mode<synchronous>, transform_indices = @transform_8, window_bounds = array<i64: 9, 32>}, {pipeline_mode = #tpu.pipeline_mode<synchronous>, transform_indices = @transform_9, window_bounds = array<i64: 1, 32>}, {pipeline_mode = #tpu.pipeline_mode<synchronous>, transform_indices = @transform_10, window_bounds = array<i64: 1, 32>}, {pipeline_mode = #tpu.pipeline_mode<synchronous>, transform_indices = @transform_11, window_bounds = array<i64: 1, 32>}, {pipeline_mode = #tpu.pipeline_mode<synchronous>, transform_indices = @transform_12, window_bounds = array<i64: 32, 128>}, {pipeline_mode = #tpu.pipeline_mode<synchronous>, transform_indices = @transform_13, window_bounds = array<i64: 1, 128>}, {pipeline_mode = #tpu.pipeline_mode<synchronous>, transform_indices = @transform_14, window_bounds = array<i64: 64, 64>}, {pipeline_mode = #tpu.pipeline_mode<synchronous>, transform_indices = @transform_15, window_bounds = array<i64: 1, 64>}, {pipeline_mode = #tpu.pipeline_mode<synchronous>, transform_indices = @transform_16, window_bounds = array<i64: 128, 64>}, {pipeline_mode = #tpu.pipeline_mode<synchronous>, transform_indices = @transform_17, window_bounds = array<i64: 1, 64>}, {pipeline_mode = #tpu.pipeline_mode<synchronous>, transform_indices = @transform_18, window_bounds = array<i64: 16, 1>}, {transform_indices = @transform_19, window_bounds = array<i64: 1, 2>}, {pipeline_mode = #tpu.pipeline_mode<synchronous>, transform_indices = @transform_20, window_bounds = array<i64: 32, 64>}, {pipeline_mode = #tpu.pipeline_mode<synchronous>, transform_indices = @transform_21, window_bounds = array<i64: 128, 64>}, {pipeline_mode = #tpu.pipeline_mode<synchronous>, transform_indices = @transform_22, window_bounds = array<i64: 1, 64>}, {pipeline_mode = #tpu.pipeline_mode<synchronous>, transform_indices = @transform_23, window_bounds = array<i64: 64, 128>}, {pipeline_mode = #tpu.pipeline_mode<synchronous>, transform_indices = @transform_24, window_bounds = array<i64: 1, 64>}, {transform_indices = @transform_25, window_bounds = array<i64: 1, 16, 128>}]} {
    %c0 = arith.constant 0 : index
    %c0_0 = arith.constant 0 : index
    %c0_1 = arith.constant 0 : index
    %0 = vector.load %arg1[%c0, %c0_0, %c0_1] : memref<1x16x9xbf16, #tpu.memory_space<vmem>>, vector<1x16x9xbf16>
    %1 = vector.shape_cast %0 : vector<1x16x9xbf16> to vector<16x9xbf16>
    %c0_2 = arith.constant 0 : index
    %c0_3 = arith.constant 0 : index
    %2 = vector.load %arg9[%c0_2, %c0_3] : memref<9x32xbf16, #tpu.memory_space<vmem>>, vector<9x32xbf16>
    %cst = arith.constant dense<0.000000e+00> : vector<16x32xf32>
    %3 = tpu.matmul %1, %2, %cst {dimension_numbers = #tpu.dot_dimension_numbers<[1], [0], [0], [1], [0, 0, 1, 1], [], []>} : vector<16x9xbf16>, vector<9x32xbf16>, vector<16x32xf32> -> vector<16x32xf32>
    %c0_4 = arith.constant 0 : index
    %c0_5 = arith.constant 0 : index
    %4 = vector.load %arg10[%c0_4, %c0_5] : memref<1x32xf32, #tpu.memory_space<vmem>>, vector<1x32xf32>
    %5 = vector.broadcast %4 : vector<1x32xf32> to vector<16x32xf32>
    %6 = arith.addf %3, %5 : vector<16x32xf32>
    %cst_6 = arith.constant dense<0.000000e+00> : vector<32xf32>
    %7 = vector.multi_reduction <add>, %6, %cst_6 [0] : vector<16x32xf32> to vector<32xf32>
    %8 = vector.shape_cast %7 : vector<32xf32> to vector<1x32xf32>
    %cst_7 = arith.constant 1.600000e+01 : f32
    %9 = vector.broadcast %cst_7 : f32 to vector<1x32xf32>
    %10 = arith.divf %8, %9 : vector<1x32xf32>
    %11 = vector.broadcast %10 : vector<1x32xf32> to vector<16x32xf32>
    %12 = arith.subf %6, %11 : vector<16x32xf32>
    %13 = arith.mulf %12, %12 : vector<16x32xf32>
    %cst_8 = arith.constant dense<0.000000e+00> : vector<32xf32>
    %14 = vector.multi_reduction <add>, %13, %cst_8 [0] : vector<16x32xf32> to vector<32xf32>
    %15 = vector.shape_cast %14 : vector<32xf32> to vector<1x32xf32>
    %cst_9 = arith.constant 1.600000e+01 : f32
    %16 = vector.broadcast %cst_9 : f32 to vector<1x32xf32>
    %17 = arith.divf %15, %16 : vector<1x32xf32>
    %18 = vector.broadcast %10 : vector<1x32xf32> to vector<16x32xf32>
    %19 = arith.subf %6, %18 : vector<16x32xf32>
    %cst_10 = arith.constant 9.99999974E-6 : f32
    %20 = vector.broadcast %cst_10 : f32 to vector<1x32xf32>
    %21 = arith.addf %17, %20 : vector<1x32xf32>
    %22 = math.rsqrt %21 : vector<1x32xf32>
    %23 = vector.broadcast %22 : vector<1x32xf32> to vector<16x32xf32>
    %24 = arith.mulf %19, %23 : vector<16x32xf32>
    %c0_11 = arith.constant 0 : index
    %c0_12 = arith.constant 0 : index
    %25 = vector.load %arg11[%c0_11, %c0_12] : memref<1x32xf32, #tpu.memory_space<vmem>>, vector<1x32xf32>
    %26 = vector.broadcast %25 : vector<1x32xf32> to vector<16x32xf32>
    %27 = arith.mulf %24, %26 : vector<16x32xf32>
    %c0_13 = arith.constant 0 : index
    %c0_14 = arith.constant 0 : index
    %28 = vector.load %arg12[%c0_13, %c0_14] : memref<1x32xf32, #tpu.memory_space<vmem>>, vector<1x32xf32>
    %29 = vector.broadcast %28 : vector<1x32xf32> to vector<16x32xf32>
    %30 = arith.addf %27, %29 : vector<16x32xf32>
    %31 = arith.truncf %30 : vector<16x32xf32> to vector<16x32xbf16>
    %c0_15 = arith.constant 0 : index
    %c0_16 = arith.constant 0 : index
    %32 = vector.load %arg13[%c0_15, %c0_16] : memref<32x128xbf16, #tpu.memory_space<vmem>>, vector<32x128xbf16>
    %cst_17 = arith.constant dense<0.000000e+00> : vector<16x128xf32>
    %33 = tpu.matmul %31, %32, %cst_17 {dimension_numbers = #tpu.dot_dimension_numbers<[1], [0], [0], [1], [0, 0, 1, 1], [], []>} : vector<16x32xbf16>, vector<32x128xbf16>, vector<16x128xf32> -> vector<16x128xf32>
    %c0_18 = arith.constant 0 : index
    %c0_19 = arith.constant 0 : index
    %34 = vector.load %arg14[%c0_18, %c0_19] : memref<1x128xf32, #tpu.memory_space<vmem>>, vector<1x128xf32>
    %35 = vector.broadcast %34 : vector<1x128xf32> to vector<16x128xf32>
    %36 = arith.addf %33, %35 : vector<16x128xf32>
    %cst_20 = arith.constant 0.000000e+00 : f32
    %37 = vector.broadcast %cst_20 : f32 to vector<16x128xf32>
    %38 = arith.maximumf %36, %37 : vector<16x128xf32>
    %c0_21 = arith.constant 0 : index
    %c0_22 = arith.constant 0 : index
    %c0_23 = arith.constant 0 : index
    %39 = vector.load %arg2[%c0_21, %c0_22, %c0_23] : memref<1x16x64xbf16, #tpu.memory_space<vmem>>, vector<1x16x64xbf16>
    %40 = vector.shape_cast %39 : vector<1x16x64xbf16> to vector<16x64xbf16>
    %c0_24 = arith.constant 0 : index
    %c0_25 = arith.constant 0 : index
    %41 = vector.load %arg15[%c0_24, %c0_25] : memref<64x64xbf16, #tpu.memory_space<vmem>>, vector<64x64xbf16>
    %cst_26 = arith.constant dense<0.000000e+00> : vector<16x64xf32>
    %42 = tpu.matmul %40, %41, %cst_26 {dimension_numbers = #tpu.dot_dimension_numbers<[1], [0], [0], [1], [0, 0, 1, 1], [], []>} : vector<16x64xbf16>, vector<64x64xbf16>, vector<16x64xf32> -> vector<16x64xf32>
    %c0_27 = arith.constant 0 : index
    %c0_28 = arith.constant 0 : index
    %43 = vector.load %arg16[%c0_27, %c0_28] : memref<1x64xf32, #tpu.memory_space<vmem>>, vector<1x64xf32>
    %44 = vector.broadcast %43 : vector<1x64xf32> to vector<16x64xf32>
    %45 = arith.addf %42, %44 : vector<16x64xf32>
    %c0_29 = arith.constant 0 : index
    %c0_30 = arith.constant 0 : index
    %c0_31 = arith.constant 0 : index
    %46 = vector.load %arg3[%c0_29, %c0_30, %c0_31] : memref<1x16x16xbf16, #tpu.memory_space<vmem>>, vector<1x16x16xbf16>
    %47 = vector.shape_cast %46 : vector<1x16x16xbf16> to vector<16x16xbf16>
    %48 = arith.truncf %45 : vector<16x64xf32> to vector<16x64xbf16>
    %cst_32 = arith.constant dense<0.000000e+00> : vector<16x64xf32>
    %49 = tpu.matmul %47, %48, %cst_32 {dimension_numbers = #tpu.dot_dimension_numbers<[1], [0], [0], [1], [0, 0, 1, 1], [], []>} : vector<16x16xbf16>, vector<16x64xbf16>, vector<16x64xf32> -> vector<16x64xf32>
    %50 = tpu.concatenate %45, %49 in 1 : vector<16x64xf32>, vector<16x64xf32> -> vector<16x128xf32>
    %51 = arith.truncf %50 : vector<16x128xf32> to vector<16x128xbf16>
    %c0_33 = arith.constant 0 : index
    %c0_34 = arith.constant 0 : index
    %52 = vector.load %arg17[%c0_33, %c0_34] : memref<128x64xbf16, #tpu.memory_space<vmem>>, vector<128x64xbf16>
    %cst_35 = arith.constant dense<0.000000e+00> : vector<16x64xf32>
    %53 = tpu.matmul %51, %52, %cst_35 {dimension_numbers = #tpu.dot_dimension_numbers<[1], [0], [0], [1], [0, 0, 1, 1], [], []>} : vector<16x128xbf16>, vector<128x64xbf16>, vector<16x64xf32> -> vector<16x64xf32>
    %c0_36 = arith.constant 0 : index
    %c0_37 = arith.constant 0 : index
    %54 = vector.load %arg18[%c0_36, %c0_37] : memref<1x64xf32, #tpu.memory_space<vmem>>, vector<1x64xf32>
    %55 = vector.broadcast %54 : vector<1x64xf32> to vector<16x64xf32>
    %56 = arith.addf %53, %55 : vector<16x64xf32>
    %cst_38 = arith.constant 0.000000e+00 : f32
    %57 = vector.broadcast %cst_38 : f32 to vector<16x64xf32>
    %58 = arith.maximumf %56, %57 : vector<16x64xf32>
    %c0_39 = arith.constant 0 : index
    %c0_40 = arith.constant 0 : index
    %59 = memref.load %arg20[%c0_39, %c0_40] : memref<1x2xf32, #tpu.memory_space<smem>>
    %c0_41 = arith.constant 0 : index
    %c1 = arith.constant 1 : index
    %60 = memref.load %arg20[%c0_41, %c1] : memref<1x2xf32, #tpu.memory_space<smem>>
    %c0_42 = arith.constant 0 : index
    %c0_43 = arith.constant 0 : index
    %61 = vector.load %arg19[%c0_42, %c0_43] : memref<16x1xf32, #tpu.memory_space<vmem>>, vector<16x1xf32>
    %c0_44 = arith.constant 0 : index
    %c0_45 = arith.constant 0 : index
    %c0_46 = arith.constant 0 : index
    %62 = vector.load %arg5[%c0_44, %c0_45, %c0_46] : memref<1x16x24xbf16, #tpu.memory_space<vmem>>, vector<1x16x24xbf16>
    %63 = vector.shape_cast %62 : vector<1x16x24xbf16> to vector<16x24xbf16>
    %64 = arith.extf %63 : vector<16x24xbf16> to vector<16x24xf32>
    %65 = vector.broadcast %61 : vector<16x1xf32> to vector<16x24xf32>
    %66 = arith.mulf %65, %64 : vector<16x24xf32>
    %cst_47 = arith.constant dense<0.000000e+00> : vector<24xf32>
    %67 = vector.multi_reduction <add>, %66, %cst_47 [0] : vector<16x24xf32> to vector<24xf32>
    %68 = vector.shape_cast %67 : vector<24xf32> to vector<1x24xf32>
    %69 = vector.broadcast %59 : f32 to vector<1x24xf32>
    %70 = arith.addf %68, %69 : vector<1x24xf32>
    %71 = tpu.iota {dimensions = array<i32: 0>} : vector<16x24xi32>
    %c0_48 = arith.constant 0 : index
    %c0_49 = arith.constant 0 : index
    %c0_50 = arith.constant 0 : index
    %72 = vector.load %arg6[%c0_48, %c0_49, %c0_50] : memref<1x1x24xi32, #tpu.memory_space<vmem>>, vector<1x1x24xi32>
    %73 = vector.shape_cast %72 : vector<1x1x24xi32> to vector<1x24xi32>
    %74 = vector.broadcast %73 : vector<1x24xi32> to vector<16x24xi32>
    %75 = arith.cmpi eq, %71, %74 : vector<16x24xi32>
    %76 = arith.extui %75 : vector<16x24xi1> to vector<16x24xi32>
    %77 = arith.sitofp %76 : vector<16x24xi32> to vector<16x24xf32>
    %78 = tpu.iota {dimensions = array<i32: 1>} : vector<24x16xi32>
    %c0_51 = arith.constant 0 : index
    %c0_52 = arith.constant 0 : index
    %c0_53 = arith.constant 0 : index
    %79 = vector.load %arg7[%c0_51, %c0_52, %c0_53] : memref<1x24x1xi32, #tpu.memory_space<vmem>>, vector<1x24x1xi32>
    %80 = vector.shape_cast %79 : vector<1x24x1xi32> to vector<24x1xi32>
    %81 = vector.broadcast %80 : vector<24x1xi32> to vector<24x16xi32>
    %82 = arith.cmpi eq, %78, %81 : vector<24x16xi32>
    %83 = arith.extui %82 : vector<24x16xi1> to vector<24x16xi32>
    %84 = arith.sitofp %83 : vector<24x16xi32> to vector<24x16xf32>
    %85 = arith.truncf %84 : vector<24x16xf32> to vector<24x16xbf16>
    %86 = vector.broadcast %70 : vector<1x24xf32> to vector<16x24xf32>
    %87 = arith.mulf %77, %86 : vector<16x24xf32>
    %88 = arith.truncf %87 : vector<16x24xf32> to vector<16x24xbf16>
    %cst_54 = arith.constant dense<0.000000e+00> : vector<16x16xf32>
    %89 = tpu.matmul %88, %85, %cst_54 {dimension_numbers = #tpu.dot_dimension_numbers<[1], [0], [0], [1], [0, 0, 1, 1], [], []>} : vector<16x24xbf16>, vector<24x16xbf16>, vector<16x16xf32> -> vector<16x16xf32>
    %90 = vector.broadcast %60 : f32 to vector<16x16xf32>
    %91 = arith.addf %89, %90 : vector<16x16xf32>
    %92 = arith.negf %91 : vector<16x16xf32>
    %93 = math.exp %92 : vector<16x16xf32>
    %cst_55 = arith.constant 1.000000e+00 : f32
    %94 = vector.broadcast %cst_55 : f32 to vector<16x16xf32>
    %95 = arith.addf %94, %93 : vector<16x16xf32>
    %96 = arith.divf %94, %95 : vector<16x16xf32>
    %c0_56 = arith.constant 0 : index
    %c0_57 = arith.constant 0 : index
    %c0_58 = arith.constant 0 : index
    %97 = vector.load %arg4[%c0_56, %c0_57, %c0_58] : memref<1x16x32xbf16, #tpu.memory_space<vmem>>, vector<1x16x32xbf16>
    %98 = vector.shape_cast %97 : vector<1x16x32xbf16> to vector<16x32xbf16>
    %c0_59 = arith.constant 0 : index
    %c0_60 = arith.constant 0 : index
    %99 = vector.load %arg21[%c0_59, %c0_60] : memref<32x64xbf16, #tpu.memory_space<vmem>>, vector<32x64xbf16>
    %cst_61 = arith.constant dense<0.000000e+00> : vector<16x64xf32>
    %100 = tpu.matmul %98, %99, %cst_61 {dimension_numbers = #tpu.dot_dimension_numbers<[1], [0], [0], [1], [0, 0, 1, 1], [], []>} : vector<16x32xbf16>, vector<32x64xbf16>, vector<16x64xf32> -> vector<16x64xf32>
    %101 = arith.truncf %38 : vector<16x128xf32> to vector<16x128xbf16>
    %c0_62 = arith.constant 0 : index
    %c0_63 = arith.constant 0 : index
    %102 = vector.load %arg22[%c0_62, %c0_63] : memref<128x64xbf16, #tpu.memory_space<vmem>>, vector<128x64xbf16>
    %cst_64 = arith.constant dense<0.000000e+00> : vector<16x64xf32>
    %103 = tpu.matmul %101, %102, %cst_64 {dimension_numbers = #tpu.dot_dimension_numbers<[1], [0], [0], [1], [0, 0, 1, 1], [], []>} : vector<16x128xbf16>, vector<128x64xbf16>, vector<16x64xf32> -> vector<16x64xf32>
    %104 = arith.addf %100, %103 : vector<16x64xf32>
    %c0_65 = arith.constant 0 : index
    %c0_66 = arith.constant 0 : index
    %105 = vector.load %arg23[%c0_65, %c0_66] : memref<1x64xf32, #tpu.memory_space<vmem>>, vector<1x64xf32>
    %106 = vector.broadcast %105 : vector<1x64xf32> to vector<16x64xf32>
    %107 = arith.addf %104, %106 : vector<16x64xf32>
    %108 = arith.truncf %107 : vector<16x64xf32> to vector<16x64xbf16>
    %c0_67 = arith.constant 0 : index
    %c0_68 = arith.constant 0 : index
    %109 = vector.load %arg24[%c0_67, %c0_68] : memref<64x128xbf16, #tpu.memory_space<vmem>>, vector<64x128xbf16>
    %cst_69 = arith.constant dense<0.000000e+00> : vector<16x128xf32>
    %110 = tpu.matmul %108, %109, %cst_69 {dimension_numbers = #tpu.dot_dimension_numbers<[1], [0], [0], [1], [0, 0, 1, 1], [], []>} : vector<16x64xbf16>, vector<64x128xbf16>, vector<16x128xf32> -> vector<16x128xf32>
    %111 = vector.extract_strided_slice %110 {offsets = [0, 0], sizes = [16, 64], strides = [1, 1]} : vector<16x128xf32> to vector<16x64xf32>
    %112 = vector.extract_strided_slice %110 {offsets = [0, 64], sizes = [16, 64], strides = [1, 1]} : vector<16x128xf32> to vector<16x64xf32>
    %c0_70 = arith.constant 0 : index
    %c0_71 = arith.constant 0 : index
    %c0_72 = arith.constant 0 : index
    %113 = vector.load %arg8[%c0_70, %c0_71, %c0_72] : memref<1x16x16xbf16, #tpu.memory_space<vmem>>, vector<1x16x16xbf16>
    %114 = vector.shape_cast %113 : vector<1x16x16xbf16> to vector<16x16xbf16>
    %115 = arith.extf %114 : vector<16x16xbf16> to vector<16x16xf32>
    %116 = arith.mulf %115, %96 : vector<16x16xf32>
    %117 = arith.truncf %116 : vector<16x16xf32> to vector<16x16xbf16>
    %118 = arith.truncf %111 : vector<16x64xf32> to vector<16x64xbf16>
    %cst_73 = arith.constant dense<0.000000e+00> : vector<16x64xf32>
    %119 = tpu.matmul %117, %118, %cst_73 {dimension_numbers = #tpu.dot_dimension_numbers<[1], [0], [0], [1], [0, 0, 1, 1], [], []>} : vector<16x16xbf16>, vector<16x64xbf16>, vector<16x64xf32> -> vector<16x64xf32>
    %120 = arith.addf %112, %119 : vector<16x64xf32>
    %c0_74 = arith.constant 0 : index
    %c0_75 = arith.constant 0 : index
    %121 = vector.load %arg25[%c0_74, %c0_75] : memref<1x64xf32, #tpu.memory_space<vmem>>, vector<1x64xf32>
    %122 = vector.broadcast %121 : vector<1x64xf32> to vector<16x64xf32>
    %123 = arith.addf %120, %122 : vector<16x64xf32>
    %cst_76 = arith.constant 0.000000e+00 : f32
    %124 = vector.broadcast %cst_76 : f32 to vector<16x64xf32>
    %125 = arith.maximumf %123, %124 : vector<16x64xf32>
    %126 = tpu.concatenate %58, %125 in 1 : vector<16x64xf32>, vector<16x64xf32> -> vector<16x128xf32>
    %c0_77 = arith.constant 0 : index
    %c0_78 = arith.constant 0 : index
    %c0_79 = arith.constant 0 : index
    %127 = vector.load %arg26[%c0_77, %c0_78, %c0_79] : memref<1x16x128xf32, #tpu.memory_space<vmem>>, vector<1x16x128xf32>
    %128 = vector.shape_cast %127 : vector<1x16x128xf32> to vector<16x128xf32>
    %129 = vector.shape_cast %126 : vector<16x128xf32> to vector<1x16x128xf32>
    tpu.vector_store %arg26[%c0_77, %c0_78, %c0_79], %129 {strides = array<i32>} : memref<1x16x128xf32, #tpu.memory_space<vmem>>, vector<1x16x128xf32>,
    return
  }
  func.func @transform_0(%arg0: i32) -> (i32, i32, i32) {
    %c0_i32 = arith.constant 0 : i32
    %c0_i32_0 = arith.constant 0 : i32
    %c0_i32_1 = arith.constant 0 : i32
    return %arg0, %c0_i32, %c0_i32_0 : i32, i32, i32
  }
  func.func @transform_1(%arg0: i32) -> (i32, i32, i32) {
    %c0_i32 = arith.constant 0 : i32
    %c0_i32_0 = arith.constant 0 : i32
    %c0_i32_1 = arith.constant 0 : i32
    return %arg0, %c0_i32, %c0_i32_0 : i32, i32, i32
  }
  func.func @transform_2(%arg0: i32) -> (i32, i32, i32) {
    %c0_i32 = arith.constant 0 : i32
    %c0_i32_0 = arith.constant 0 : i32
    %c0_i32_1 = arith.constant 0 : i32
    return %arg0, %c0_i32, %c0_i32_0 : i32, i32, i32
  }
  func.func @transform_3(%arg0: i32) -> (i32, i32, i32) {
    %c0_i32 = arith.constant 0 : i32
    %c0_i32_0 = arith.constant 0 : i32
    %c0_i32_1 = arith.constant 0 : i32
    return %arg0, %c0_i32, %c0_i32_0 : i32, i32, i32
  }
  func.func @transform_4(%arg0: i32) -> (i32, i32, i32) {
    %c0_i32 = arith.constant 0 : i32
    %c0_i32_0 = arith.constant 0 : i32
    %c0_i32_1 = arith.constant 0 : i32
    return %arg0, %c0_i32, %c0_i32_0 : i32, i32, i32
  }
  func.func @transform_5(%arg0: i32) -> (i32, i32, i32) {
    %c0_i32 = arith.constant 0 : i32
    %c0_i32_0 = arith.constant 0 : i32
    %c0_i32_1 = arith.constant 0 : i32
    return %arg0, %c0_i32, %c0_i32_0 : i32, i32, i32
  }
  func.func @transform_6(%arg0: i32) -> (i32, i32, i32) {
    %c0_i32 = arith.constant 0 : i32
    %c0_i32_0 = arith.constant 0 : i32
    %c0_i32_1 = arith.constant 0 : i32
    return %arg0, %c0_i32, %c0_i32_0 : i32, i32, i32
  }
  func.func @transform_7(%arg0: i32) -> (i32, i32, i32) {
    %c0_i32 = arith.constant 0 : i32
    %c0_i32_0 = arith.constant 0 : i32
    %c0_i32_1 = arith.constant 0 : i32
    return %arg0, %c0_i32, %c0_i32_0 : i32, i32, i32
  }
  func.func @transform_8(%arg0: i32) -> (i32, i32) {
    %c0_i32 = arith.constant 0 : i32
    %c0_i32_0 = arith.constant 0 : i32
    %c0_i32_1 = arith.constant 0 : i32
    return %c0_i32, %c0_i32_0 : i32, i32
  }
  func.func @transform_9(%arg0: i32) -> (i32, i32) {
    %c0_i32 = arith.constant 0 : i32
    %c0_i32_0 = arith.constant 0 : i32
    %c0_i32_1 = arith.constant 0 : i32
    return %c0_i32, %c0_i32_0 : i32, i32
  }
  func.func @transform_10(%arg0: i32) -> (i32, i32) {
    %c0_i32 = arith.constant 0 : i32
    %c0_i32_0 = arith.constant 0 : i32
    %c0_i32_1 = arith.constant 0 : i32
    return %c0_i32, %c0_i32_0 : i32, i32
  }
  func.func @transform_11(%arg0: i32) -> (i32, i32) {
    %c0_i32 = arith.constant 0 : i32
    %c0_i32_0 = arith.constant 0 : i32
    %c0_i32_1 = arith.constant 0 : i32
    return %c0_i32, %c0_i32_0 : i32, i32
  }
  func.func @transform_12(%arg0: i32) -> (i32, i32) {
    %c0_i32 = arith.constant 0 : i32
    %c0_i32_0 = arith.constant 0 : i32
    %c0_i32_1 = arith.constant 0 : i32
    return %c0_i32, %c0_i32_0 : i32, i32
  }
  func.func @transform_13(%arg0: i32) -> (i32, i32) {
    %c0_i32 = arith.constant 0 : i32
    %c0_i32_0 = arith.constant 0 : i32
    %c0_i32_1 = arith.constant 0 : i32
    return %c0_i32, %c0_i32_0 : i32, i32
  }
  func.func @transform_14(%arg0: i32) -> (i32, i32) {
    %c0_i32 = arith.constant 0 : i32
    %c0_i32_0 = arith.constant 0 : i32
    %c0_i32_1 = arith.constant 0 : i32
    return %c0_i32, %c0_i32_0 : i32, i32
  }
  func.func @transform_15(%arg0: i32) -> (i32, i32) {
    %c0_i32 = arith.constant 0 : i32
    %c0_i32_0 = arith.constant 0 : i32
    %c0_i32_1 = arith.constant 0 : i32
    return %c0_i32, %c0_i32_0 : i32, i32
  }
  func.func @transform_16(%arg0: i32) -> (i32, i32) {
    %c0_i32 = arith.constant 0 : i32
    %c0_i32_0 = arith.constant 0 : i32
    %c0_i32_1 = arith.constant 0 : i32
    return %c0_i32, %c0_i32_0 : i32, i32
  }
  func.func @transform_17(%arg0: i32) -> (i32, i32) {
    %c0_i32 = arith.constant 0 : i32
    %c0_i32_0 = arith.constant 0 : i32
    %c0_i32_1 = arith.constant 0 : i32
    return %c0_i32, %c0_i32_0 : i32, i32
  }
  func.func @transform_18(%arg0: i32) -> (i32, i32) {
    %c0_i32 = arith.constant 0 : i32
    %c0_i32_0 = arith.constant 0 : i32
    %c0_i32_1 = arith.constant 0 : i32
    return %c0_i32, %c0_i32_0 : i32, i32
  }
  func.func @transform_19(%arg0: i32) -> (i32, i32) {
    %c0_i32 = arith.constant 0 : i32
    %c0_i32_0 = arith.constant 0 : i32
    %c0_i32_1 = arith.constant 0 : i32
    return %c0_i32, %c0_i32_0 : i32, i32
  }
  func.func @transform_20(%arg0: i32) -> (i32, i32) {
    %c0_i32 = arith.constant 0 : i32
    %c0_i32_0 = arith.constant 0 : i32
    %c0_i32_1 = arith.constant 0 : i32
    return %c0_i32, %c0_i32_0 : i32, i32
  }
  func.func @transform_21(%arg0: i32) -> (i32, i32) {
    %c0_i32 = arith.constant 0 : i32
    %c0_i32_0 = arith.constant 0 : i32
    %c0_i32_1 = arith.constant 0 : i32
    return %c0_i32, %c0_i32_0 : i32, i32
  }
  func.func @transform_22(%arg0: i32) -> (i32, i32) {
    %c0_i32 = arith.constant 0 : i32
    %c0_i32_0 = arith.constant 0 : i32
    %c0_i32_1 = arith.constant 0 : i32
    return %c0_i32, %c0_i32_0 : i32, i32
  }
  func.func @transform_23(%arg0: i32) -> (i32, i32) {
    %c0_i32 = arith.constant 0 : i32
    %c0_i32_0 = arith.constant 0 : i32
    %c0_i32_1 = arith.constant 0 : i32
    return %c0_i32, %c0_i32_0 : i32, i32
  }
  func.func @transform_24(%arg0: i32) -> (i32, i32) {
    %c0_i32 = arith.constant 0 : i32
    %c0_i32_0 = arith.constant 0 : i32
    %c0_i32_1 = arith.constant 0 : i32
    return %c0_i32, %c0_i32_0 : i32, i32
  }
  func.func @transform_25(%arg0: i32) -> (i32, i32, i32) {
    %c0_i32 = arith.constant 0 : i32
    %c0_i32_0 = arith.constant 0 : i32
    %c0_i32_1 = arith.constant 0 : i32
    return %arg0, %c0_i32, %c0_i32_0 : i32, i32, i32
  }
}

</mosaic_0001>

<bundles_post_ra>
// kernel: graph_energy_model_forward.1
= control target key start
LH: loop header
LB: loop body
LE: loop exit
PB: predicated region body
PF: predicated region fallthrough
CT: control target
= control target key end

     0   :  { %s2765_s0 = inlined_call_operand.vmem [shape: bf16[8,16,9], index: 0, kind: input, shape index: {}]   ;;  %s2766_s1 = inlined_call_operand.vmem [shape: bf16[8,16,64], index: 1, kind: input, shape index: {}]   ;;  %s2767_s2 = inlined_call_operand.vmem [shape: bf16[8,16,16], index: 2, kind: input, shape index: {}]   ;;  %s2768_s3 = inlined_call_operand.vmem [shape: bf16[8,16,32], index: 3, kind: input, shape index: {}]   ;;  %s2769_s4 = inlined_call_operand.vmem [shape: bf16[8,16,24], index: 4, kind: input, shape index: {}]   ;;  %s2770_s5 = inlined_call_operand.vmem [shape: s32[8,1,24], index: 5, kind: input, shape index: {}]   ;;  %s2771_s6 = inlined_call_operand.vmem [shape: s32[8,24,1], index: 6, kind: input, shape index: {}]   ;;  %s2772_s7 = inlined_call_operand.vmem [shape: bf16[8,16,16], index: 7, kind: input, shape index: {}]   ;;  %s2773_s8 = inlined_call_operand.vmem [shape: bf16[9,32], index: 8, kind: input, shape index: {}]   ;;  %s2774_s9 = inlined_call_operand.vmem [shape: f32[1,32], index: 9, kind: input, shape index: {}]   ;;  %s2775_s10 = inlined_call_operand.vmem [shape: f32[1,32], index: 10, kind: input, shape index: {}]   ;;  %s2776_s11 = inlined_call_operand.vmem [shape: f32[1,32], index: 11, kind: input, shape index: {}]   ;;  %s2777_s12 = inlined_call_operand.vmem [shape: bf16[32,128], index: 12, kind: input, shape index: {}]   ;;  %s2778_s13 = inlined_call_operand.vmem [shape: f32[1,128], index: 13, kind: input, shape index: {}]   ;;  %s2779_s14 = inlined_call_operand.vmem [shape: bf16[64,64], index: 14, kind: input, shape index: {}]   ;;  %s2780_s15 = inlined_call_operand.vmem [shape: f32[1,64], index: 15, kind: input, shape index: {}]   ;;  %s2781_s16 = inlined_call_operand.vmem [shape: bf16[128,64], index: 16, kind: input, shape index: {}]   ;;  %s2782_s17 = inlined_call_operand.vmem [shape: f32[1,64], index: 17, kind: input, shape index: {}]   ;;  %s2783_s18 = inlined_call_operand.vmem [shape: f32[16,1], index: 18, kind: input, shape index: {}]   ;;  %s2784_s19 = inlined_call_operand.vmem [shape: f32[1,2], index: 19, kind: input, shape index: {}]   ;;  %s2785_s20 = inlined_call_operand.vmem [shape: bf16[32,64], index: 20, kind: input, shape index: {}]   ;;  %s2786_s21 = inlined_call_operand.vmem [shape: bf16[128,64], index: 21, kind: input, shape index: {}]   ;;  %s2787_s22 = inlined_call_operand.vmem [shape: f32[1,64], index: 22, kind: input, shape index: {}]   ;;  %s2788_s23 = inlined_call_operand.vmem [shape: bf16[64,128], index: 23, kind: input, shape index: {}]   ;;  %s2789_s24 = inlined_call_operand.vmem [shape: f32[1,64], index: 24, kind: input, shape index: {}]   ;;  %s2790_s25 = inlined_call_operand.vmem [shape: f32[8,16,128], index: 25, kind: output, shape index: {}]  }
   0x1   :  { %2792 = sst [smem:[#allocation5_spill]] %s2765_s0 }
   0x2   :  { %2793 = sst [smem:[#allocation6_spill]] %s2766_s1 }
   0x3   :  { %2794 = sst [smem:[#allocation7_spill]] %s2767_s2 }
   0x4   :  { %2795 = sst [smem:[#allocation8_spill]] %s2768_s3 }
   0x5   :  { %2796 = sst [smem:[#allocation9_spill]] %s2769_s4 }
   0x6   :  { %2797 = sst [smem:[#allocation10_spill]] %s2770_s5 }
   0x7   :  { %2798 = sst [smem:[#allocation11_spill]] %s2771_s6 }
   0x8   :  { %2799 = sst [smem:[#allocation12_spill]] %s2772_s7 }
   0x9   :  { %2800 = sst [smem:[#allocation13_spill]] %s2773_s8 }
   0xa   :  { %2801 = sst [smem:[#allocation14_spill]] %s2774_s9 }
   0xb   :  { %2802 = sst [smem:[#allocation15_spill]] %s2777_s12 }
   0xc   :  { %30 = vsyncpa [#allocation3], 0  ;;  %s2482_s29 = smov 0  }
   0xd LB: > { %s2488_s2 = sadd.s32 4294967295, %s2343_s29   ;;  %p1996_p0 = scmp.ge.s32.totalorder %s2343_s29, 1  ;;  %s2343_s29 = sphi %s2482_s29, %s36_s29  }
   0xe   : > { %p632_p1 = scmp.lt.s32.totalorder %s2343_s29, 9  ;;  %s678_s7 = sshll.u32 %s2784_s19, 4  ;;  %s679_s7 = int_to_ptr.vmem [resolvable:$true] %s678_s7 }
   0xf   : > { %p2251_p3 = scmp.eq.s32.totalorder %s2488_s2, 0  ;;  %s2318_s26 = scalar_lea.vmem %s679_s7, 16 }
  0x10   : > { %p2495_p2 = pnand %p1996_p0, %p632_p1  ;;  %p2319_p6 = scmp.ne.s32.totalorder %s679_s7, %s2318_s26 }
  0x11   : > { %p2326_p10 = scmp.lt.s32.totalorder %s679_s7, %s679_s7  ;;  %p2327_p11 = scmp.lt.s32.totalorder %s2318_s26, %s2318_s26 }
  0x12   : > { %p2247_p4 = pneg %p2495_p2 }
  0x13   : > { %p2328_p12 = por %p2327_p11, %p2326_p10 }
  0x14   : > { %p2248_p5 = pnand %p2251_p3, %p2247_p4 }
  0x16   : > { %p2320_p7 = pneg %p2248_p5 }
  0x18   : > { %p2321_p8 = pnand %p2320_p7, %p2319_p6 }
  0x1a   : > { %p2322_p9 = pneg %p2321_p8 }
  0x1c   : > { %p2329_p13 = pnand %p2328_p12, %p2322_p9 }
  0x1e   : > { %2332 = shalt.err (!%p2329_p13)
}
  0x1f   : > { %s2345_s1 = smov [#allocation2]   ;;  %768 = sbr.rel (%p2495_p2) target bundleno = 1372 (0x55c), region = 120 }
  0x20   : > { %2250 = dma.vmem_to_smem (!%p2248_p5), %s679_s7, 16, %s2345_s1, [#allocation3]  }
  0x24   : > { %2338 = dma.done.wait (%p2251_p3), [#allocation3], 16  }
  0x25   : > { %2340 = vsyncadd (%p2251_p3), [#allocation3], 4294967280 }
  0x26   : > { %774 = sfence }
  0x27   : > { %vm939_vm0 = vcmask 1043456   ;;  %v2346_v0 = vmov 0.0   ;;  %s2804_s4 = sld [smem:[#allocation13_spill]]  ;;  %vm940_vm1 = vcmask 1044480   ;;  %p870_p0 = scmp.lt.s32.totalorder %s2488_s2, 7  ;;  %v2347_v2 = vmov 65535  }
  0x28   : > { %2136 = vmatprep.subr.bf16.mxu0 %v2346_v0  ;;  %2142 = vmatprep.subr.bf16.mxu1 %v2346_v0  ;;  %v941_v3 = vsel %vm939_vm0, 4294967295, %v2347_v2  ;;  %vm2348_vm2 = vmmov 0   ;;  %s2805_s0 = sld [smem:[#allocation5_spill]]  ;;  %vm935_vm3 = vcmask 72704   ;;  %v2277_v6 = vld [vmem:[%s2779_s14 + $0x18] sm:$0xff]   ;;  %v2278_v8 = vld [vmem:[%s2779_s14 + $0x10] sm:$0xff]  }
  0x29   : > { %2138 = vmatprep.mubr.msk.bf16.mxu0 %vm2348_vm2, %v2346_v0  ;;  %2146 = vmatprep.mubr.msk.bf16.mxu1 %vm2348_vm2, %v2346_v0  ;;  %v942_v4 = vsel %vm940_vm1, %v941_v3, 0  ;;  %s2816_s2 = smov (!%p870_p0, %s2488_s2), 7  ;;  %s2806_s1 = sld [smem:[#allocation6_spill]]  ;;  %v2279_v9 = vld [vmem:[%s2779_s14 + $0x8] sm:$0xff]   ;;  %vm1151_vm4 = vcmask 523264   ;;  %v2280_v10 = vld [vmem:[%s2779_s14] sm:$0xff]  }
  0x2a   : > { %s2525_s28 = sshll.u32 %s2816_s2, 3  ;;  %s2807_s12 = sld [smem:[#allocation15_spill]]  ;;  %v1376_v14 = vld [vmem:[%s2783_s18] sm:$0xff]  ;;  %v2349_v15 = vmov 0   ;;  %v1377_v16 = vld [vmem:[%s2783_s18 + $0x8] sm:$0xff]  ;;  %vm987_vm5 = vcmask 261120  }
  0x2b   : > { %s2808_s27 = sld [smem:[#allocation7_spill]]  ;;  %2268 = vset.pattern.permute.xlu0 %v2349_v15  ;;  %2269 = vset.pattern.permute.xlu1 %v2349_v15  ;;  %v2026_v56 = vld [vmem:[%s2780_s15] ss:$0 sm:$0xff]  ;;  %vm1204_vm6 = vcmask 130048   ;;  %vm1394_vm7 = vcmask 195584   ;;  %s2351_s26 = smov 64  }
  0x2c   : > { %1384 = vperm.xlu0 %2268, %v1376_v14   ;;  %s2809_s7 = sld [smem:[#allocation11_spill]]  ;;  %v2020_v58 = vld [vmem:[%s2775_s10] ss:$0 sm:$0xff] }
  0x2d   : > { %v2275_v1 = vld [vmem:[%s2804_s4] sm:$0x1f]   ;;  %s2810_s9 = sld [smem:[#allocation14_spill]] }
  0x2e   : > { %v944_v5 = vand.u32 %v2275_v1, %v942_v4  ;;  %s874_s6 = scalar_lea.vmem %s2805_s0, %s2525_s28  ;;  %s2242_s0 = smul.u32 24, %s2816_s2  ;;  %v2021_v61 = vld [vmem:[%s2776_s11] ss:$0 sm:$0xff] }
  0x2f   : > { %v2276_v7 = vld [vmem:[%s874_s6] sm:$0xff]   ;;  %s879_s8 = scalar_lea.vmem %s2806_s1, %s2525_s28  ;;  %s2811_s1 = sld [smem:[#allocation9_spill]] }
  0x30   : > { %2137 = vmatpush3.bf16.msra.mxu0 %v944_v5  ;;  %v2281_v11 = vld [vmem:[%s879_s8] sm:$0xff]   ;;  %v2282_v12 = vld [vmem:[%s2807_s12 + $0x8] sm:$0xff]   ;;  %1389 = vperm.xlu0 %2268, %v1377_v16   ;;  %s2812_s6 = sld [smem:[#allocation10_spill]] }
  0x31   : > { %2150 = vmatprep.subr.bf16.mxu0 %v2346_v0  ;;  %2143 = vmatpush3.bf16.msra.mxu1 %v2282_v12  ;;  %v2283_v13 = vld [vmem:[%s2807_s12] sm:$0xff]   ;;  %s884_s4 = scalar_lea.vmem %s2808_s27, %s2525_s28 }
  0x32   : > { %2144 = vmatprep.subr.bf16.mxu1 %v2346_v0  ;;  %s902_s3 = scalar_lea.vmem %s2809_s7, %s2242_s0  ;;  %s2813_s7 = sld [smem:[#allocation8_spill]] }
  0x33   : > { %2139 = vmatmul.mubr.msk.bf16.vlgmr.msra.gmra.mxu0 %vm935_vm3, %v2276_v7  ;;  %v1424_v17 = vld [vmem:[%s902_s3 + $0x10] sm:$0xff]  ;;  %v1422_v18 = vld [vmem:[%s902_s3] sm:$0xff]  ;;  %v1423_v19 = vld [vmem:[%s902_s3 + $0x8] sm:$0xff] }
  0x34   : > { %2151 = vmatpush3.bf16.msra.mxu0 %v2277_v6  ;;  %2158 = vmatprep.mubr.msk.bf16.mxu0 %vm2348_vm2, %v2346_v0  ;;  %v2016_v20 = vld [vmem:[%s2810_s9] ss:$0 sm:$0xff] }
  0x35   : > { %2152 = vmatprep.subr.bf16.mxu0 %v2346_v0  ;;  %2145 = vmatpush3.bf16.msra.mxu1 %v2283_v13  ;;  %s894_s8 = scalar_lea.vmem %s2811_s1, %s2525_s28  ;;  %s2084_s1 = sshll.u32 %s2816_s2, 4 }
  0x36   : > { %2162 = vmatprep.subr.bf16.mxu1 %v2346_v0  ;;  %1432 = vperm.xlu1 %2269, %v1424_v17   ;;  %v2086_v7 = vld [vmem:[%s894_s8] sm:$0xff]   ;;  %s897_s30 = scalar_lea.vmem %s2812_s6, %s2816_s2  ;;  %s2814_s6 = sld [smem:[#allocation12_spill]] }
  0x37   : > { %1429 = vperm.xlu0 %2268, %v1423_v19   ;;  %v2088_v14 = vunpack.c.h.bf16 %v2086_v7  ;;  %s912_s9 = scalar_lea.vmem %s2790_s25, %s2084_s1 }
  0x38   : > { %2153 = vmatpush3.bf16.msra.mxu0 %v2278_v8  ;;  %v1406_v8 = vlaneseq  ;;  %s889_s3 = scalar_lea.vmem %s2813_s7, %s2525_s28 }
  0x39   : > { %2154 = vmatprep.subr.bf16.mxu0 %v2346_v0 }
  0x3a   : > { %1426 = vperm.xlu1 %2269, %v1422_v18  }
  0x3c   : > { %2155 = vmatpush3.bf16.msra.mxu0 %v2279_v9  ;;  %v2087_v9 = vunpack.c.l.bf16 %v2086_v7 }
  0x3d   : > { %2156 = vmatprep.subr.bf16.mxu0 %v2346_v0 }
  0x40   : > { %2157 = vmatpush3.bf16.msra.mxu0 %v2280_v10  ;;  %v2284_v10 = vld [vmem:[%s884_s4] sm:$0xff]   ;;  %s1374_s4 = sld [smem:[#allocation2]] }
  0x41   : > { %2188 = vmatprep.subr.bf16.mxu0 %v2346_v0 }
  0x43   : > { %2159 = vmatmul.mubr.msk.bf16.vlgmr.msra.gmra.mxu0 %vm1151_vm4, %v2281_v11  ;;  %v1421_v11 = vand.u32 127, %v1406_v8 }
  0x44   : > { %2192 = vmatprep.mubr.msk.bf16.mxu0 %vm2348_vm2, %v2346_v0 }
  0xa7   : > { %v1385_v12 = vpop.permute.xlu0 %1384 }
  0xa8   : > { %v1392_v13 = vmul.f32 %v2087_v9, %v1385_v12 }
  0xaa   : > { %v1395_v18 = vsel %vm1394_vm7, %v1392_v13, 0.0 }
  0xab   : > { %v1390_v16 = vpop.permute.xlu0 %1389 }
  0xac   : > { %v1393_v19 = vmul.f32 %v2088_v14, %v1390_v16 }
  0xb1   : > { %v1433_v15 = vpop.permute.xlu1 %1432 }
  0xb2   : > { %vm1436_vm8 = vcmp.eq.s32.totalorder %v1421_v11, %v1433_v15 }
  0xb3   : > { %v2050_v17 = vsel %vm1436_vm8, 1.0, %v2346_v0 }
  0xf3   : > { %v980_v21 = vpop.f32.mrf.mxu0 }
  0xf4   : > { %v981_v23 = vadd.f32 %v2016_v20, %v980_v21  ;;  %v1427_v21 = vpop.permute.xlu1 %1426 }
  0xf5   : > { %v2140_v22 = vpop.f32.mrf.mxu0  ;;  %vm1434_vm9 = vcmp.eq.s32.totalorder %v1421_v11, %v1427_v21 }
  0xf6   : > { %v988_v27 = vsel %vm987_vm5, %v981_v23, 0.0  ;;  %v1396_v22 = vsel %vm1394_vm7, %v1393_v19, 0.0 }
  0xf7   : > { %v983_v24 = vpop.f32.mrf.mxu0 }
  0xf8   : > { %v984_v25 = vadd.f32 %v2016_v20, %v983_v24  ;;  %v1444_v20 = vpack.c.bf16 %v2050_v17, %v2050_v17  ;;  %v1397_v24 = vadd.f32 %v1396_v22, %v1395_v18  ;;  %v2301_v22 = vld [vmem:[%s2785_s20 + $0x8] sm:$0xff]  }
  0xf9   : > { %v2141_v26 = vpop.f32.mrf.mxu0 }
  0xfa   : > { %v989_v28 = vsel %vm987_vm5, %v984_v25, 0.0  ;;  %v1398_v26 = vrot.slane %v1397_v24, 4 }
  0xfb   : > { %v990_v29 = vadd.f32 %v989_v28, %v988_v27  ;;  %v1407_v27 = vshrl.u32 %v1406_v8, 7 }
  0xfc   : > { %v1399_v28 = vadd.f32 %v1398_v26, %v1397_v24  ;;  %v2302_v24 = vld [vmem:[%s2785_s20] sm:$0xff]  }
  0xfd   : > { %v991_v30 = vrot.slane %v990_v29, 4 }
  0xff   : > { %v992_v31 = vadd.f32 %v991_v30, %v990_v29  ;;  %v2350_v29 = vmov 1.0|1.0   ;;  %v1400_v30 = vrot.slane %v1399_v28, 2 }
 0x101   : > { %v993_v32 = vrot.slane %v992_v31, 2 }
 0x103   : > { %v994_v33 = vadd.f32 %v993_v32, %v992_v31  ;;  %v1189_v34 = vpop.f32.mrf.mxu0  ;;  %v1408_v31 = vadd.s32 8, %v1407_v27  ;;  %v2045_v32 = vld [vmem:[%s897_s30] ss:$0 sm:$0xff]  ;;  %s907_s30 = scalar_lea.vmem %s2814_s6, %s2525_s28 }
 0x104   : > { %v2595_v62 = vadd.f32 %v2026_v56, %v1189_v34  ;;  %vm1414_vm12 = vcmp.eq.s32.totalorder %v1407_v27, %v2045_v32 }
 0x105   : > { %v995_v35 = vrot.slane %v994_v33, 1  ;;  %v2160_v36 = vpop.f32.mrf.mxu0  ;;  %vm1415_vm13 = vcmp.eq.s32.totalorder %v1408_v31, %v2045_v32 }
 0x107   : > { %v996_v37 = vadd.f32 %v995_v35, %v994_v33  ;;  %v1192_v38 = vpop.f32.mrf.mxu0  ;;  %v1401_v33 = vadd.f32 %v1400_v30, %v1399_v28  ;;  %v1404_v35 = vstv %s1374_s4  ;;  %s2044_s4 = sld [smem:[#allocation2 + $0x1]] }
 0x108   : > { %v2597_v63 = vadd.f32 %v2026_v56, %v1192_v38  ;;  %v2047_v38 = vsel %vm1415_vm13, 1.0, %v2346_v0  ;;  %v2298_v56 = vld [vmem:[%s2781_s16 + $0x10] sm:$0xff]  }
 0x109   : > { %v998_v39 = vmul.f32 0.0625, %v996_v37  ;;  %v2161_v40 = vpop.f32.mrf.mxu0  ;;  %v1402_v34 = vrot.slane %v1401_v33, 1  ;;  %v2046_v37 = vsel %vm1414_vm12, 1.0, %v2346_v0 }
 0x10a   : > { %v1198_v5 = vpack.c.bf16 %v2597_v63, %v2595_v62 }
 0x10b   : > { %v999_v41 = vsub.f32 %v981_v23, %v998_v39  ;;  %v1000_v42 = vsub.f32 %v984_v25, %v998_v39  ;;  %v1453_v23 = vsel %vm939_vm0, %v1444_v20, 0  ;;  %v1430_v25 = vpop.permute.xlu0 %1429  ;;  %v1403_v36 = vadd.f32 %v1402_v34, %v1401_v33 }
 0x10c   : > { %2189 = vmatpush3.bf16.msra.mxu0 %v1453_v23  ;;  %vm1435_vm10 = vcmp.eq.s32.totalorder %v1421_v11, %v1430_v25 }
 0x10d   : > { %v1001_v43 = vmul.f32 %v999_v41, %v999_v41  ;;  %v1002_v44 = vmul.f32 %v1000_v42, %v1000_v42  ;;  %2190 = vmatprep.subr.bf16.mxu0 %v2346_v0  ;;  %vm2051_vm11 = vmpackc.low %vm1435_vm10, %vm1434_vm9  ;;  %v1405_v39 = vadd.f32 %v1404_v35, %v1403_v36  ;;  %v2090_v35 = vld [vmem:[%s907_s30] sm:$0xff]  }
 0x10e   : > { %v2091_v36 = vunpack.c.l.bf16 %v2090_v35 }
 0x10f   : > { %v1003_v45 = vsel %vm987_vm5, %v1001_v43, 0.0  ;;  %v1004_v46 = vsel %vm987_vm5, %v1002_v44, 0.0  ;;  %v1445_v40 = vmul.f32 %v2046_v37, %v1405_v39  ;;  %v2286_v44 = vld [vmem:[%s2786_s21 + $0x30] sm:$0xff]   ;;  %v2092_v37 = vunpack.c.h.bf16 %v2090_v35 }
 0x110   : > { %v1005_v47 = vadd.f32 %v1004_v46, %v1003_v45  ;;  %2191 = vmatpush3.bf16.msk.msra.mxu0 %vm2051_vm11, %v2350_v29  ;;  %v2287_v45 = vld [vmem:[%s2786_s21 + $0x28] sm:$0xff]   ;;  %v2288_v46 = vld [vmem:[%s2786_s21 + $0x20] sm:$0xff]  }
 0x111   : > { %2196 = vmatprep.subr.bf16.mxu0 %v2346_v0 }
 0x112   : > { %v1006_v48 = vrot.slane %v1005_v47, 4 }
 0x114   : > { %v1007_v49 = vadd.f32 %v1006_v48, %v1005_v47  ;;  %v2289_v47 = vld [vmem:[%s2786_s21 + $0x18] sm:$0xff]   ;;  %v2290_v48 = vld [vmem:[%s2786_s21 + $0x10] sm:$0xff]  }
 0x116   : > { %v1008_v50 = vrot.slane %v1007_v49, 2 }
 0x118   : > { %v1009_v51 = vadd.f32 %v1008_v50, %v1007_v49  ;;  %v2291_v49 = vld [vmem:[%s2786_s21 + $0x8] sm:$0xff]   ;;  %v2292_v50 = vld [vmem:[%s2786_s21] sm:$0xff]  }
 0x11a   : > { %v1010_v52 = vrot.slane %v1009_v51, 1 }
 0x11c   : > { %v1011_v53 = vadd.f32 %v1010_v52, %v1009_v51  ;;  %v2293_v51 = vld [vmem:[%s2781_s16 + $0x38] sm:$0xff]   ;;  %v2294_v52 = vld [vmem:[%s2781_s16 + $0x30] sm:$0xff]  }
 0x11e   : > { %v1012_v54 = vmul.f32 0.0625, %v1011_v53  ;;  %v2295_v53 = vld [vmem:[%s2781_s16 + $0x28] sm:$0xff]  }
 0x120   : > { %v1013_v55 = vadd.f32 1e-05, %v1012_v54  ;;  %v2296_v54 = vld [vmem:[%s2781_s16 + $0x20] sm:$0xff]  }
 0x122   : > { %2308 = vrsqrt.f32 %v1013_v55  ;;  %v2297_v55 = vld [vmem:[%s2781_s16 + $0x18] sm:$0xff]  }
 0x12f   : > { %v2309_v57 = vpop.eup %2308 }
 0x130   : > { %v1015_v59 = vmul.f32 %v2309_v57, %v999_v41  ;;  %v1016_v60 = vmul.f32 %v2309_v57, %v1000_v42  ;;  %v1446_v41 = vmul.f32 %v2047_v38, %v1405_v39  ;;  %v2285_v42 = vld [vmem:[%s2786_s21 + $0x38] sm:$0xff]   ;;  %v2299_v57 = vld [vmem:[%s2781_s16 + $0x8] sm:$0xff]  }
 0x131   : > { %v2304_v38 = vld [vmem:[%s2788_s23 + $0x18] sm:$0xff]  }
 0x132   : > { %v1024_v1 = vmul.f32 %v2020_v58, %v1015_v59  ;;  %v1025_v2 = vmul.f32 %v2020_v58, %v1016_v60  ;;  %v1447_v43 = vpack.c.bf16 %v1446_v41, %v1445_v40  ;;  %v2022_v58 = vld [vmem:[%s2778_s13] ss:$0 sm:$0xff] }
 0x134   : > { %v1034_v3 = vadd.f32 %v2021_v61, %v1025_v2  ;;  %v1033_v4 = vadd.f32 %v2021_v61, %v1024_v1  ;;  %2193 = vmatmul.mubr.msk.bf16.vlgmr.msra.gmra.mxu0 %vm1394_vm7, %v1447_v43  ;;  %v2300_v61 = vld [vmem:[%s2781_s16] sm:$0xff]  }
 0x135   : > { %2197 = vmatpush3.bf16.msra.mxu0 %v2285_v42  ;;  %2212 = vmatprep.mubr.msk.bf16.mxu0 %vm2348_vm2, %v2346_v0 }
 0x136   : > { %v1035_v6 = vpack.c.bf16 %v1034_v3, %v1033_v4  ;;  %2198 = vmatprep.subr.bf16.mxu0 %v2346_v0 }
 0x138   : > { %2147 = vmatmul.mubr.msk.bf16.vlgmr.msra.gmra.mxu1 %vm987_vm5, %v1035_v6 }
 0x139   : > { %2163 = vmatpush3.bf16.msra.mxu1 %v1198_v5  ;;  %2164 = vmatprep.mubr.msk.bf16.mxu1 %vm2348_vm2, %v2346_v0 }
 0x13a   : > { %2168 = vmatprep.subr.bf16.mxu1 %v2346_v0  ;;  %2199 = vmatpush3.bf16.msra.mxu0 %v2286_v44  ;;  %v2305_v44 = vld [vmem:[%s2788_s23 + $0x10] sm:$0xff]  }
 0x13b   : > { %2200 = vmatprep.subr.bf16.mxu0 %v2346_v0 }
 0x13e   : > { %2201 = vmatpush3.bf16.msra.mxu0 %v2287_v45 }
 0x13f   : > { %2202 = vmatprep.subr.bf16.mxu0 %v2346_v0 }
 0x140   : > { %2165 = vmatmul.mubr.msk.bf16.vlgmr.msra.gmra.mxu1 %vm1204_vm6, %v2284_v10 }
 0x141   : > { %2184 = vmatprep.mubr.msk.bf16.mxu1 %vm2348_vm2, %v2346_v0  ;;  %2169 = vmatpush3.bf16.msra.mxu1 %v2293_v51 }
 0x142   : > { %2203 = vmatpush3.bf16.msra.mxu0 %v2288_v46  ;;  %2170 = vmatprep.subr.bf16.mxu1 %v2346_v0 }
 0x143   : > { %2204 = vmatprep.subr.bf16.mxu0 %v2346_v0 }
 0x145   : > { %2171 = vmatpush3.bf16.msra.mxu1 %v2294_v52 }
 0x146   : > { %2205 = vmatpush3.bf16.msra.mxu0 %v2289_v47  ;;  %2172 = vmatprep.subr.bf16.mxu1 %v2346_v0  ;;  %v2306_v47 = vld [vmem:[%s2788_s23 + $0x8] sm:$0xff]  }
 0x147   : > { %2206 = vmatprep.subr.bf16.mxu0 %v2346_v0 }
 0x149   : > { %2173 = vmatpush3.bf16.msra.mxu1 %v2295_v53 }
 0x14a   : > { %2207 = vmatpush3.bf16.msra.mxu0 %v2290_v48  ;;  %2174 = vmatprep.subr.bf16.mxu1 %v2346_v0  ;;  %v2307_v48 = vld [vmem:[%s2788_s23] sm:$0xff]  }
 0x14b   : > { %2208 = vmatprep.subr.bf16.mxu0 %v2346_v0 }
 0x14d   : > { %2175 = vmatpush3.bf16.msra.mxu1 %v2296_v54 }
 0x14e   : > { %2209 = vmatpush3.bf16.msra.mxu0 %v2291_v49  ;;  %2176 = vmatprep.subr.bf16.mxu1 %v2346_v0 }
 0x14f   : > { %2210 = vmatprep.subr.bf16.mxu0 %v2346_v0 }
 0x151   : > { %2177 = vmatpush3.bf16.msra.mxu1 %v2297_v55 }
 0x152   : > { %2211 = vmatpush3.bf16.msra.mxu0 %v2292_v50  ;;  %2178 = vmatprep.subr.bf16.mxu1 %v2346_v0 }
 0x153   : > { %2236 = vmatprep.subr.bf16.mxu0 %v2346_v0 }
 0x155   : > { %2179 = vmatpush3.bf16.msra.mxu1 %v2298_v56  ;;  %v2068_v56 = vld [vmem:[%s2787_s22] ss:$0 sm:$0xff] }
 0x156   : > { %2180 = vmatprep.subr.bf16.mxu1 %v2346_v0 }
 0x159   : > { %2181 = vmatpush3.bf16.msra.mxu1 %v2299_v57 }
 0x15a   : > { %2182 = vmatprep.subr.bf16.mxu1 %v2346_v0 }
 0x15d   : > { %2183 = vmatpush3.bf16.msra.mxu1 %v2300_v61 }
 0x15e   : > { %2216 = vmatprep.subr.bf16.mxu1 %v2346_v0 }
 0x1f4   : > { %v1489_v13 = vpop.f32.mrf.mxu0 }
 0x1f6   : > { %v2194_v14 = vpop.f32.mrf.mxu0 }
 0x1f8   : > { %v1096_v59 = vpop.f32.mrf.mxu1  ;;  %v1492_v15 = vpop.f32.mrf.mxu0 }
 0x1f9   : > { %v1097_v1 = vadd.f32 %v2022_v58, %v1096_v59 }
 0x1fa   : > { %v2148_v60 = vpop.f32.mrf.mxu1  ;;  %v2195_v16 = vpop.f32.mrf.mxu0 }
 0x1fb   : > { %v1103_v5 = vmax.f32 %v1097_v1, 0.0 }
 0x1fc   : > { %v1099_v2 = vpop.f32.mrf.mxu1 }
 0x1fd   : > { %v1100_v3 = vadd.f32 %v2022_v58, %v1099_v2 }
 0x1fe   : > { %v2149_v4 = vpop.f32.mrf.mxu1 }
 0x1ff   : > { %v1104_v6 = vmax.f32 %v1100_v3, 0.0 }
 0x200   : > { %v1242_v7 = vpop.f32.mrf.mxu1 }
 0x201   : > { %v1514_v8 = vpack.c.bf16 %v1104_v6, %v1103_v5 }
 0x202   : > { %v2166_v9 = vpop.f32.mrf.mxu1 }
 0x203   : > { %2213 = vmatmul.mubr.bf16.vlgmr.msra.gmra.mxu0 %v1514_v8  ;;  %v2075_v8 = vld [vmem:[%s2789_s24] ss:$0 sm:$0xff] }
 0x204   : > { %v1245_v10 = vpop.f32.mrf.mxu1  ;;  %2238 = vmatprep.mubr.msk.bf16.mxu0 %vm2348_vm2, %v2346_v0 }
 0x205   : > { %v2270_v11 = vpack.i.bf16 %v1245_v10, %v1242_v7 }
 0x206   : > { %v2167_v12 = vpop.f32.mrf.mxu1 }
 0x207   : > { %2271 = vrot.lane.b32.xlu1 %v2270_v11, %s2351_s26  ;;  %v2035_v11 = vld [vmem:[%s2782_s17] ss:$0 sm:$0xff] }
 0x279   : > { %v2272_v17 = vpop.permute.xlu1 %2271 }
 0x27a   : > { %v2274_v18 = vunpack.i.h.bf16 %v2272_v17  ;;  %v2273_v19 = vunpack.i.l.bf16 %v2272_v17 }
 0x27c   : > { %v1258_v20 = vsel %vm1151_vm4, %v2597_v63, %v2274_v18  ;;  %v1257_v21 = vsel %vm1151_vm4, %v2595_v62, %v2273_v19  ;;  %v2303_v63 = vld [vmem:[%s889_s3] sm:$0xff]   ;;  %v1448_v62 = vstv %s2044_s4 }
 0x27d   : > { %v1259_v23 = vpack.c.bf16 %v1258_v20, %v1257_v21  ;;  %v1490_v25 = vadd.f32 %v1489_v13, %v1448_v62  ;;  %v1493_v26 = vadd.f32 %v1492_v15, %v1448_v62 }
 0x27f   : > { %2185 = vmatmul.mubr.bf16.vlgmr.msra.gmra.mxu1 %v1259_v23  ;;  %v2054_v27 = vmul.f32 -1.442695, %v1490_v25  ;;  %v2055_v28 = vmul.f32 -1.442695, %v1493_v26 }
 0x280   : > { %2217 = vmatpush3.bf16.msra.mxu1 %v2301_v22  ;;  %2220 = vmatprep.mubr.msk.bf16.mxu1 %vm2348_vm2, %v2346_v0 }
 0x281   : > { %2218 = vmatprep.subr.bf16.mxu1 %v2346_v0  ;;  %2310 = vpow2.f32 %v2054_v27 }
 0x282   : > { %2312 = vpow2.f32 %v2055_v28 }
 0x284   : > { %2219 = vmatpush3.bf16.msra.mxu1 %v2302_v24 }
 0x285   : > { %2224 = vmatprep.subr.bf16.mxu1 %v2346_v0 }
 0x287   : > { %2221 = vmatmul.mubr.msk.bf16.vlgmr.msra.gmra.mxu1 %vm987_vm5, %v2303_v63 }
 0x288   : > { %2232 = vmatprep.mubr.msk.bf16.mxu1 %vm2348_vm2, %v2346_v0  ;;  %2225 = vmatpush3.bf16.msra.mxu1 %v2304_v38 }
 0x289   : > { %2226 = vmatprep.subr.bf16.mxu1 %v2346_v0 }
 0x28c   : > { %2227 = vmatpush3.bf16.msra.mxu1 %v2305_v44 }
 0x28d   : > { %2228 = vmatprep.subr.bf16.mxu1 %v2346_v0 }
 0x28e   : > { %v2311_v29 = vpop.eup %2310 }
 0x28f   : > { %v2313_v30 = vpop.eup %2312  ;;  %v1502_v31 = vadd.f32 1.0, %v2311_v29 }
 0x290   : > { %v1503_v32 = vadd.f32 1.0, %v2313_v30  ;;  %2229 = vmatpush3.bf16.msra.mxu1 %v2306_v47 }
 0x291   : > { %2314 = vrcp.f32 %v1502_v31  ;;  %2230 = vmatprep.subr.bf16.mxu1 %v2346_v0 }
 0x292   : > { %2316 = vrcp.f32 %v1503_v32 }
 0x294   : > { %2231 = vmatpush3.bf16.msra.mxu1 %v2307_v48 }
 0x29e   : > { %v2315_v33 = vpop.eup %2314 }
 0x29f   : > { %v2317_v34 = vpop.eup %2316  ;;  %v1771_v39 = vmul.f32 %v2315_v33, %v2091_v36 }
 0x2a0   : > { %v1772_v40 = vmul.f32 %v2317_v34, %v2092_v37 }
 0x2a2   : > { %v1773_v42 = vpack.c.bf16 %v1772_v40, %v1771_v39 }
 0x2c3   : > { %v1613_v41 = vpop.f32.mrf.mxu0 }
 0x2c5   : > { %v2214_v43 = vpop.f32.mrf.mxu0 }
 0x2c7   : > { %v1616_v45 = vpop.f32.mrf.mxu0 }
 0x2c9   : > { %v2215_v46 = vpop.f32.mrf.mxu0 }
 0x33f   : > { %v1365_v49 = vpop.f32.mrf.mxu1 }
 0x340   : > { %v1366_v13 = vadd.f32 %v2035_v11, %v1365_v49 }
 0x341   : > { %v2186_v50 = vpop.f32.mrf.mxu1 }
 0x342   : > { %v1372_v20 = vmax.f32 %v1366_v13, 0.0 }
 0x343   : > { %v1368_v51 = vpop.f32.mrf.mxu1 }
 0x344   : > { %v1369_v17 = vadd.f32 %v2035_v11, %v1368_v51 }
 0x345   : > { %v2187_v52 = vpop.f32.mrf.mxu1 }
 0x346   : > { %v1373_v23 = vmax.f32 %v1369_v17, 0.0 }
 0x347   : > { %v1674_v53 = vpop.f32.mrf.mxu1 }
 0x348   : > { %v1675_v55 = vadd.f32 %v1674_v53, %v1613_v41 }
 0x349   : > { %v2222_v54 = vpop.f32.mrf.mxu1 }
 0x34a   : > { %v1688_v0 = vadd.f32 %v2068_v56, %v1675_v55 }
 0x34b   : > { %v1677_v57 = vpop.f32.mrf.mxu1 }
 0x34c   : > { %v1678_v58 = vadd.f32 %v1677_v57, %v1616_v45 }
 0x34d   : > { %v2223_v59 = vpop.f32.mrf.mxu1 }
 0x34e   : > { %v1689_v60 = vadd.f32 %v2068_v56, %v1678_v58 }
 0x350   : > { %v1690_v61 = vpack.c.bf16 %v1689_v60, %v1688_v0 }
 0x352   : > { %2233 = vmatmul.mubr.msk.bf16.vlgmr.msra.gmra.mxu1 %vm1151_vm4, %v1690_v61 }
 0x412   : > { %v1760_v1 = vpop.f32.mrf.mxu1 }
 0x414   : > { %v2234_v2 = vpop.f32.mrf.mxu1 }
 0x416   : > { %v1763_v3 = vpop.f32.mrf.mxu1 }
 0x417   : > { %v1774_v4 = vpack.c.bf16 %v1763_v3, %v1760_v1 }
 0x418   : > { %v2235_v5 = vpop.f32.mrf.mxu1 }
 0x419   : > { %2237 = vmatpush3.bf16.msra.mxu0 %v1774_v4 }
 0x41c   : > { %2239 = vmatmul.mubr.msk.bf16.vlgmr.msra.gmra.mxu0 %vm1204_vm6, %v1773_v42 }
 0x4dc   : > { %v1812_v6 = vpop.f32.mrf.mxu0 }
 0x4dd   : > { %1821 = vrot.lane.b32.xlu0 %v1812_v6, %s2351_s26 }
 0x4de   : > { %v2240_v7 = vpop.f32.mrf.mxu0 }
 0x4e0   : > { %v1815_v9 = vpop.f32.mrf.mxu0 }
 0x4e1   : > { %1835 = vrot.lane.b32.xlu0 %v2075_v8, %s2351_s26  ;;  %1823 = vrot.lane.b32.xlu1 %v1815_v9, %s2351_s26 }
 0x4e2   : > { %v2241_v10 = vpop.f32.mrf.mxu0 }
 0x54f   : > { %v1822_v12 = vpop.permute.xlu0 %1821 }
 0x550   : > { %v1827_v14 = vadd.f32 %v1822_v12, %v1760_v1 }
 0x553   : > { %v1836_v15 = vpop.permute.xlu0 %1835  ;;  %v1824_v16 = vpop.permute.xlu1 %1823 }
 0x554   : > { %v1838_v18 = vadd.f32 %v1836_v15, %v1827_v14  ;;  %v1828_v19 = vadd.f32 %v1824_v16, %v1763_v3 }
 0x556   : > { %v1840_v21 = vmax.f32 %v1838_v18, 0.0  ;;  %v1839_v22 = vadd.f32 %v1836_v15, %v1828_v19 }
 0x558   : > { %v1842_v24 = vsel %vm1151_vm4, %v1372_v20, %v1840_v21  ;;  %v1841_v63 = vmax.f32 %v1839_v22, 0.0 }
 0x559   : > { %1844 = vst [vmem:[%s912_s9] sm:$0xff] %v1842_v24 }
 0x55a   : > { %v1843_v62 = vsel %vm1151_vm4, %v1373_v23, %v1841_v63 }
 0x55b   : > { %1845 = vst [vmem:[%s912_s9 + $0x8] sm:$0xff] %v1843_v62 }
 0x55c PF: > { %s36_s29 = sadd.s32 1, %s2343_s29  }
 0x55d   : > { %p33_p1 = scmp.ge.s32.totalorder %s36_s29, 10  }
 0x55f   :  { %35 = sbr.rel (!%p33_p1) target bundleno = 13 (0xd), region = 176 }
 0x564   :  { %1867 = vsyncpa [#allocation3], 1 }
 0x565   :  { %1869 = vsyncpa [#allocation3 + $0x1], 1 }

</bundles_post_ra>
